<compile_context>
chip_gen: v6e
topology: v6e:2x2x1
jax: 0.10.0
libtpu: 0.0.40
codegen_flags: <defaults>
</compile_context>

<pallas_src>
import jax
import jax.numpy as jnp
from jax.experimental import pallas as pl
from jax.experimental.pallas import tpu as pltpu


# ----------------------------- Pallas kernel --------------------------------
#
# Per row (= one patch position):
#   P    = patches @ W + B          (folded encoder stand-in + proj + pred)
#   Cm   = mask_token path folded through pred (per-channel constant)
#   pred = (1 - m) * P + m * Cm     (mask mixing, exact in pred space)

def _facemae_fused_kernel(x_ref, m_ref, w_ref, b_ref, cm_ref, o_ref):
    # Single MXU op: bf16 operands, f32 accumulation.
    p = jnp.dot(x_ref[...], w_ref[...],
                preferred_element_type=jnp.float32) + b_ref[...]
    # Mask mixing in pred space. m is per-row (tm, 1), 1 = masked; elementwise
    # math kept in f32 (v5e VPU has no bf16).
    m = m_ref[...]
    p = p + m * (cm_ref[...] - p)
    # TODO(synk): DepthWise decoder blocks (class definition not provided) are
    # an identity placeholder; once real blocks land, the single-matmul fold
    # must be split back into proj / mix / decoder / pred stages.
    o_ref[...] = p.astype(o_ref.dtype)


def _num_tensorcores():
    """Best-effort TC-per-chip count: v7x has 2, v5e/v6e have 1."""
    try:
        kind = jax.devices()[0].device_kind.lower()
    except Exception:  # pragma: no cover
        return 1
    return 2 if "7" in kind else 1


def _pick_tm(M, tm_max=2048, num_tensorcores=1):
    # Large row tiles amortize the ~0.35us per-grid-step overhead.  Only split
    # rows when there is more than one TensorCore to feed (v7x megacore), and
    # never shrink a tile below ~256 rows for it.  On single-TC v5e/v6e one
    # big tile is strictly better.
    tm = min(tm_max, M)
    if num_tensorcores > 1:
        target = max(256, M // (2 * num_tensorcores))
        tm = min(tm, target)
    tm = max(16, (tm // 16) * 16)          # bf16 sublane packing: multiple of 16
    return tm


def facemae_fused(patches_bf16, mask_col, w, b, cm, *, tm):
    """patches: (M, Kin) bf16, mask_col: (M, 1) f32 -> (M, Kp) bf16. M % tm == 0."""
    M, Kin = patches_bf16.shape
    Kp = w.shape[1]
    assert M % tm == 0, (M, tm)

    cost = pl.CostEstimate(
        flops=2 * M * Kin * Kp + 3 * M * Kp,
        transcendentals=0,
        bytes_accessed=(M * (2 * Kin + 4 + 2 * Kp)      # patches + mask + out
                        + 2 * Kin * Kp + 8 * Kp),        # W + B + Cm
    )
    return pl.pallas_call(
        _facemae_fused_kernel,
        out_shape=jax.ShapeDtypeStruct((M, Kp), jnp.bfloat16),
        grid_spec=pltpu.PrefetchScalarGridSpec(
            num_scalar_prefetch=0,
            grid=(M // tm,),
            in_specs=[
                pl.BlockSpec((tm, Kin), lambda i: (i, 0)),  # patch rows (bf16)
                pl.BlockSpec((tm, 1), lambda i: (i, 0)),    # per-row mask (f32)
                # Grid-invariant operands (constant index_map); left to the
                # compiler to keep resident.
                pl.BlockSpec((Kin, Kp), lambda i: (0, 0)),  # folded W (in,out) bf16
                pl.BlockSpec((1, Kp), lambda i: (0, 0)),    # folded bias B (f32)
                pl.BlockSpec((1, Kp), lambda i: (0, 0)),    # folded mask const Cm (f32)
            ],
            out_specs=pl.BlockSpec((tm, Kp), lambda i: (i, 0)),
        ),
        compiler_params=pltpu.CompilerParams(
            dimension_semantics=("parallel",),
        ),
        cost_estimate=cost,
    )(patches_bf16, mask_col, w, b, cm)


# ------------------------------ FaceMAE model -------------------------------

class FaceMAEPallas:
    def __init__(self, key, *, decoder_embed_dim=32, patch_size=4,
                 mask_ratio=0.6, tm_max=2048):
        self.patch_size = patch_size
        self.mask_ratio = mask_ratio
        self.D = decoder_embed_dim
        self.tm_max = tm_max
        p2c = patch_size * patch_size * 3
        self.p2c = p2c
        # pred output channels lane-padded to a multiple of 128 (dense vst).
        self.Kp = ((p2c + 127) // 128) * 128

        k1, k2, k3, k4 = jax.random.split(key, 4)
        # Decoder.proj : Conv2d(D, D, 1) -> weight std=0.01, bias 0.
        # Stored (in, out) for right-multiplication (transpose of torch layout).
        wp = (0.01 * jax.random.normal(k1, (self.D, self.D))).astype(jnp.float32)
        bp = jnp.zeros((1, self.D), jnp.float32)
        # Decoder.mask_token : normal std=0.02, shape (1, D, 1, 1) -> (1, D).
        mt = (0.02 * jax.random.normal(k2, (1, self.D))).astype(jnp.float32)
        # Decoder.pred : Conv2d(D, p**2*3, 1) -> weight std=0.01, bias 0.
        wq = (0.01 * jax.random.normal(k3, (self.D, p2c))).astype(jnp.float32)
        bq = jnp.zeros((1, p2c), jnp.float32)
        # TODO(synk): MBFSparse encoder definition not provided; substituted with
        # a deterministic patch-embedding (patchify + linear) so shapes match.
        w_enc = (0.01 * jax.random.normal(k4, (p2c, self.D))).astype(jnp.float32)
        b_enc = jnp.zeros((1, self.D), jnp.float32)

        # Fold the whole linear chain (encoder stand-in -> proj -> pred) into a
        # single (p2c -> p2c) matmul, and the mask-token path into a constant
        # pred-space row.  Exact while the DepthWise blocks are the identity.
        w_full = w_enc @ wp @ wq                         # (p2c, p2c)
        b_full = (b_enc @ wp + bp) @ wq + bq             # (1, p2c)
        cm_full = mt @ wq + bq                           # (1, p2c)

        # Lane-pad to Kp and pre-cast MXU operands to bf16 (no in-kernel casts).
        self.W = (jnp.zeros((p2c, self.Kp), jnp.float32)
                  .at[:, :p2c].set(w_full)).astype(jnp.bfloat16)
        self.B = jnp.zeros((1, self.Kp), jnp.float32).at[:, :p2c].set(b_full)
        self.Cm = jnp.zeros((1, self.Kp), jnp.float32).at[:, :p2c].set(cm_full)

        self._num_tc = _num_tensorcores()
        self._forward_jit = jax.jit(self._forward_impl)

    # -- glue (plain JAX, runs inside the jitted forward) --
    def patchify(self, img):
        N, C, H, W = img.shape
        p = self.patch_size
        h = w = H // p
        x = img.reshape(N, C, h, p, w, p)
        x = jnp.einsum('nchpwq->nhwpqc', x)
        return x.reshape(N, h * w, p * p * C)

    def unpatchify(self, x_nhwk):
        # x: (N, h, w, p*p*3) channels-last  ==  torch pred (N, p*p*3, h, w)
        N, h, w, _ = x_nhwk.shape
        p = self.patch_size
        x = x_nhwk.reshape(N, h, w, p, p, 3)
        x = jnp.einsum('nhwpqc->nchpwq', x)
        return x.reshape(N, 3, h * p, w * p)

    def get_random_mask(self, key, x_shape):
        # Mirrors FaceMAE.get_random_mask: keep/drop pattern gathered by
        # ids_shuffle. 1 = masked.
        N = x_shape[0]
        L = (x_shape[2] // self.patch_size) ** 2
        noise = jax.random.normal(key, (N, L))
        len_keep = int(L * (1.0 - self.mask_ratio))
        ids_shuffle = jnp.argsort(noise, axis=1)
        base = (jnp.arange(L) >= len_keep).astype(jnp.float32)
        mask = jnp.take_along_axis(jnp.broadcast_to(base, (N, L)), ids_shuffle,
                                   axis=1)
        return mask  # (N, L)

    # -- forward --
    def _forward_impl(self, imgs, anno, mask_key):
        N, C, H, W = imgs.shape
        p = self.patch_size
        h = w = H // p
        L = h * w
        M = N * L
        # TODO(synk): generate_landmark_mask not provided; using the module's
        # get_random_mask semantics instead (anno ignored).
        del anno
        mask = self.get_random_mask(mask_key, imgs.shape)            # (N, L)

        # NCHW -> channels-last patch rows; MXU operand pre-cast to bf16.
        # TODO(synk): at production sizes the patch gather could be expressed in
        # the input index_map / fed NHWC from the loader instead.
        patches = self.patchify(imgs).reshape(M, p * p * C).astype(jnp.bfloat16)
        mask_col = mask.reshape(M, 1).astype(jnp.float32)

        # Row tiling: big tiles, padded to a tile multiple (no silent tail drop).
        tm = _pick_tm(M, self.tm_max, self._num_tc)
        Mp = pl.cdiv(M, tm) * tm
        if Mp != M:
            patches = jnp.pad(patches, ((0, Mp - M), (0, 0)))
            mask_col = jnp.pad(mask_col, ((0, Mp - M), (0, 0)))

        pred = facemae_fused(patches, mask_col, self.W, self.B, self.Cm,
                             tm=tm)                                   # (Mp, Kp) bf16
        # Drop pad rows/lanes; bf16 compute/output is a deliberate ~1e-2 rel
        # tolerance vs the f32 PyTorch reference.
        pred = pred[:M, :self.p2c].astype(jnp.float32)

        img = self.unpatchify(pred.reshape(N, h, w, self.p2c))
        return img, mask

    def forward(self, imgs, anno, mask_key):
        return self._forward_jit(imgs, anno, mask_key)


# ---------------------------------- main ------------------------------------

if __name__ == "__main__":
    key = jax.random.PRNGKey(0)
    k_img, k_anno, k_mask, k_param = jax.random.split(key, 4)

    N, C, H, W = 2, 3, 32, 32
    patch_size = 4
    imgs = jax.random.normal(k_img, (N, C, H, W), dtype=jnp.float32)
    # landmark annotations (unused by the substituted random mask)
    anno = jax.random.normal(k_anno, (N, 4, 2), dtype=jnp.float32)

    model = FaceMAEPallas(k_param, decoder_embed_dim=32, patch_size=patch_size,
                          mask_ratio=0.6, tm_max=2048)
    out_img, mask = model.forward(imgs, anno, k_mask)
    jax.block_until_ready(out_img)
    jax.block_until_ready(mask)

    assert out_img.shape == (N, 3, H, W), out_img.shape
    assert mask.shape == (N, (H // patch_size) ** 2), mask.shape
    print("KERNEL_OK")
</pallas_src>

<mosaic_0001>
module attributes {stable_mosaic.version = 11 : i64} {
  func.func @_facemae_fused_kernel(%arg0: i32, %arg1: memref<128x48xbf16, #tpu.memory_space<vmem>>, %arg2: memref<128x1xf32, #tpu.memory_space<vmem>>, %arg3: memref<48x128xbf16, #tpu.memory_space<vmem>>, %arg4: memref<1x128xf32, #tpu.memory_space<vmem>>, %arg5: memref<1x128xf32, #tpu.memory_space<vmem>>, %arg6: memref<128x128xbf16, #tpu.memory_space<vmem>>) attributes {dimension_semantics = [#tpu.dimension_semantics<parallel>], iteration_bounds = array<i64: 1>, scalar_prefetch = 0 : i64, scratch_operands = 0 : i64, tpu.core_type = #tpu.core_type<tc>, window_params = [{transform_indices = @transform_0, window_bounds = array<i64: 128, 48>}, {transform_indices = @transform_1, window_bounds = array<i64: 128, 1>}, {pipeline_mode = #tpu.pipeline_mode<synchronous>, transform_indices = @transform_2, window_bounds = array<i64: 48, 128>}, {pipeline_mode = #tpu.pipeline_mode<synchronous>, transform_indices = @transform_3, window_bounds = array<i64: 1, 128>}, {pipeline_mode = #tpu.pipeline_mode<synchronous>, transform_indices = @transform_4, window_bounds = array<i64: 1, 128>}, {transform_indices = @transform_5, window_bounds = array<i64: 128, 128>}]} {
    %c0 = arith.constant 0 : index
    %c0_0 = arith.constant 0 : index
    %0 = vector.load %arg1[%c0, %c0_0] : memref<128x48xbf16, #tpu.memory_space<vmem>>, vector<128x48xbf16>
    %c0_1 = arith.constant 0 : index
    %c0_2 = arith.constant 0 : index
    %1 = vector.load %arg3[%c0_1, %c0_2] : memref<48x128xbf16, #tpu.memory_space<vmem>>, vector<48x128xbf16>
    %cst = arith.constant dense<0.000000e+00> : vector<128x128xf32>
    %2 = tpu.matmul %0, %1, %cst {dimension_numbers = #tpu.dot_dimension_numbers<[1], [0], [0], [1], [0, 0, 1, 1], [], []>} : vector<128x48xbf16>, vector<48x128xbf16>, vector<128x128xf32> -> vector<128x128xf32>
    %c0_3 = arith.constant 0 : index
    %c0_4 = arith.constant 0 : index
    %3 = vector.load %arg4[%c0_3, %c0_4] : memref<1x128xf32, #tpu.memory_space<vmem>>, vector<1x128xf32>
    %4 = vector.broadcast %3 : vector<1x128xf32> to vector<128x128xf32>
    %5 = arith.addf %2, %4 : vector<128x128xf32>
    %c0_5 = arith.constant 0 : index
    %c0_6 = arith.constant 0 : index
    %6 = vector.load %arg2[%c0_5, %c0_6] : memref<128x1xf32, #tpu.memory_space<vmem>>, vector<128x1xf32>
    %c0_7 = arith.constant 0 : index
    %c0_8 = arith.constant 0 : index
    %7 = vector.load %arg5[%c0_7, %c0_8] : memref<1x128xf32, #tpu.memory_space<vmem>>, vector<1x128xf32>
    %8 = vector.broadcast %7 : vector<1x128xf32> to vector<128x128xf32>
    %9 = arith.subf %8, %5 : vector<128x128xf32>
    %10 = vector.broadcast %6 : vector<128x1xf32> to vector<128x128xf32>
    %11 = arith.mulf %10, %9 : vector<128x128xf32>
    %12 = arith.addf %5, %11 : vector<128x128xf32>
    %13 = arith.truncf %12 : vector<128x128xf32> to vector<128x128xbf16>
    %c0_9 = arith.constant 0 : index
    %c0_10 = arith.constant 0 : index
    %14 = vector.load %arg6[%c0_9, %c0_10] : memref<128x128xbf16, #tpu.memory_space<vmem>>, vector<128x128xbf16>
    tpu.vector_store %arg6[%c0_9, %c0_10], %13 {strides = array<i32>} : memref<128x128xbf16, #tpu.memory_space<vmem>>, vector<128x128xbf16>,
    return
  }
  func.func @transform_0(%arg0: i32) -> (i32, i32) {
    %c0_i32 = arith.constant 0 : i32
    %c0_i32_0 = arith.constant 0 : i32
    return %arg0, %c0_i32 : i32, i32
  }
  func.func @transform_1(%arg0: i32) -> (i32, i32) {
    %c0_i32 = arith.constant 0 : i32
    %c0_i32_0 = arith.constant 0 : i32
    return %arg0, %c0_i32 : i32, i32
  }
  func.func @transform_2(%arg0: i32) -> (i32, i32) {
    %c0_i32 = arith.constant 0 : i32
    %c0_i32_0 = arith.constant 0 : i32
    %c0_i32_1 = arith.constant 0 : i32
    return %c0_i32, %c0_i32_0 : i32, i32
  }
  func.func @transform_3(%arg0: i32) -> (i32, i32) {
    %c0_i32 = arith.constant 0 : i32
    %c0_i32_0 = arith.constant 0 : i32
    %c0_i32_1 = arith.constant 0 : i32
    return %c0_i32, %c0_i32_0 : i32, i32
  }
  func.func @transform_4(%arg0: i32) -> (i32, i32) {
    %c0_i32 = arith.constant 0 : i32
    %c0_i32_0 = arith.constant 0 : i32
    %c0_i32_1 = arith.constant 0 : i32
    return %c0_i32, %c0_i32_0 : i32, i32
  }
  func.func @transform_5(%arg0: i32) -> (i32, i32) {
    %c0_i32 = arith.constant 0 : i32
    %c0_i32_0 = arith.constant 0 : i32
    return %arg0, %c0_i32 : i32, i32
  }
}

</mosaic_0001>

<bundles_post_ra>
// kernel: _forward_impl.1
= control target key start
LH: loop header
LB: loop body
LE: loop exit
PB: predicated region body
PF: predicated region fallthrough
CT: control target
= control target key end

     0   :  { %v618_v1 = vmov 0   ;;  %vm108_vm0 = vcmask 392192   ;;  %s816_s2 = inlined_call_operand.vmem [shape: bf16[48,128], index: 2, kind: input, shape index: {}]   ;;  %s817_s0 = inlined_call_operand.vmem [shape: bf16[128,48], index: 0, kind: input, shape index: {}]   ;;  %s818_s1 = inlined_call_operand.vmem [shape: f32[128,1], index: 1, kind: input, shape index: {}]   ;;  %s819_s3 = inlined_call_operand.vmem [shape: f32[1,128], index: 3, kind: input, shape index: {}]   ;;  %s820_s4 = inlined_call_operand.vmem [shape: f32[1,128], index: 4, kind: input, shape index: {}]   ;;  %s821_s5 = inlined_call_operand.vmem [shape: bf16[128,128], index: 5, kind: output, shape index: {}]  }
   0x1   :  { %v607_v0 = vld [vmem:[%s816_s2 + $0x10] sm:$0xff]   ;;  %606 = vset.pattern.permute.xlu1 %v618_v1  ;;  %605 = vset.pattern.permute.xlu0 %v618_v1  ;;  %v608_v2 = vld [vmem:[%s816_s2 + $0x8] sm:$0xff]   ;;  %v609_v3 = vld [vmem:[%s816_s2] sm:$0xff]  }
   0x2   :  { %576 = vmatprep.subr.bf16.mxu0 %v607_v0  ;;  %598 = vmatprep.subr.bf16.mxu1 %v607_v0  ;;  %v610_v4 = vld [vmem:[%s817_s0] sm:$0xff]   ;;  %v612_v6 = vld [vmem:[%s817_s0 + $0x8] sm:$0xff]   ;;  %v614_v8 = vld [vmem:[%s817_s0 + $0x10] sm:$0xff]  }
   0x3   :  { %577 = vmatpush3.bf16.msra.mxu0 %v607_v0  ;;  %601 = vmatpush3.bf16.msra.mxu1 %v607_v0  ;;  %v611_v5 = vld [vmem:[%s817_s0 + $0x20] sm:$0xff]   ;;  %v613_v7 = vld [vmem:[%s817_s0 + $0x28] sm:$0xff]   ;;  %v615_v9 = vld [vmem:[%s817_s0 + $0x30] sm:$0xff]  }
   0x4   :  { %578 = vmatprep.subr.bf16.mxu0 %v608_v2  ;;  %599 = vmatprep.subr.bf16.mxu1 %v608_v2  ;;  %v232_v10 = vld [vmem:[%s818_s1 + $0x10] sm:$0xff]  ;;  %v230_v11 = vld [vmem:[%s818_s1] sm:$0xff]  ;;  %v233_v12 = vld [vmem:[%s818_s1 + $0x18] sm:$0xff] }
   0x5   :  { %582 = vmatprep.mubr.msk.bf16.mxu0 %vm108_vm0, %v610_v4  ;;  %590 = vmatprep.mubr.msk.bf16.mxu1 %vm108_vm0, %v611_v5  ;;  %v231_v13 = vld [vmem:[%s818_s1 + $0x8] sm:$0xff]  ;;  %v234_v15 = vld [vmem:[%s818_s1 + $0x20] sm:$0xff]  ;;  %v616_v16 = vld [vmem:[%s817_s0 + $0x18] sm:$0xff]  }
   0x6   :  { %281 = vperm.xlu1 %606, %v232_v10   ;;  %271 = vperm.xlu0 %605, %v230_v11   ;;  %v235_v14 = vld [vmem:[%s818_s1 + $0x28] sm:$0xff]  ;;  %v617_v17 = vld [vmem:[%s817_s0 + $0x38] sm:$0xff]   ;;  %v236_v19 = vld [vmem:[%s818_s1 + $0x30] sm:$0xff] }
   0x7   :  { %579 = vmatpush3.bf16.msra.mxu0 %v608_v2  ;;  %602 = vmatpush3.bf16.msra.mxu1 %v608_v2  ;;  %v237_v18 = vld [vmem:[%s818_s1 + $0x38] sm:$0xff]  ;;  %v239_v20 = vld [vmem:[%s818_s1 + $0x48] sm:$0xff]  ;;  %v238_v21 = vld [vmem:[%s818_s1 + $0x40] sm:$0xff] }
   0x8   :  { %580 = vmatprep.subr.bf16.mxu0 %v609_v3  ;;  %600 = vmatprep.subr.bf16.mxu1 %v609_v3  ;;  %v241_v22 = vld [vmem:[%s818_s1 + $0x58] sm:$0xff]  ;;  %v240_v23 = vld [vmem:[%s818_s1 + $0x50] sm:$0xff]  ;;  %v243_v24 = vld [vmem:[%s818_s1 + $0x68] sm:$0xff] }
   0x9   :  { %v242_v25 = vld [vmem:[%s818_s1 + $0x60] sm:$0xff]  ;;  %v245_v26 = vld [vmem:[%s818_s1 + $0x78] sm:$0xff]  ;;  %v244_v27 = vld [vmem:[%s818_s1 + $0x70] sm:$0xff] }
   0xa   :  { %286 = vperm.xlu1 %606, %v233_v12   ;;  %276 = vperm.xlu0 %605, %v231_v13   ;;  %v749_v36 = vld [vmem:[%s819_s3] ss:$0 sm:$0xff] }
   0xb   :  { %581 = vmatpush3.bf16.msra.mxu0 %v609_v3  ;;  %603 = vmatpush3.bf16.msra.mxu1 %v609_v3  ;;  %v754_v39 = vld [vmem:[%s820_s4] ss:$0 sm:$0xff] }
   0xe   :  { %583 = vmatmul.mubr.msk.bf16.vlgmr.msra.gmra.mxu0 %vm108_vm0, %v612_v6  ;;  %591 = vmatmul.mubr.msk.bf16.vlgmr.msra.gmra.mxu1 %vm108_vm0, %v613_v7 }
   0xf   :  { %586 = vmatprep.mubr.msk.bf16.mxu0 %vm108_vm0, %v614_v8  ;;  %594 = vmatprep.mubr.msk.bf16.mxu1 %vm108_vm0, %v615_v9 }
  0x10   :  { %296 = vperm.xlu1 %606, %v235_v14   ;;  %291 = vperm.xlu0 %605, %v234_v15  }
  0x14   :  { %306 = vperm.xlu1 %606, %v237_v18   ;;  %301 = vperm.xlu0 %605, %v236_v19  }
  0x16   :  { %587 = vmatmul.mubr.msk.bf16.gmra.mxu0 %vm108_vm0, %v616_v16  ;;  %595 = vmatmul.mubr.msk.bf16.gmra.mxu1 %vm108_vm0, %v617_v17 }
  0x18   :  { %316 = vperm.xlu1 %606, %v239_v20   ;;  %311 = vperm.xlu0 %605, %v238_v21  }
  0x1c   :  { %326 = vperm.xlu1 %606, %v241_v22   ;;  %321 = vperm.xlu0 %605, %v240_v23  }
  0x20   :  { %336 = vperm.xlu1 %606, %v243_v24   ;;  %331 = vperm.xlu0 %605, %v242_v25  }
  0x24   :  { %346 = vperm.xlu1 %606, %v245_v26   ;;  %341 = vperm.xlu0 %605, %v244_v27  }
  0x81   :  { %v272_v28 = vpop.permute.xlu0 %271  ;;  %v282_v29 = vpop.permute.xlu1 %281 }
  0x85   :  { %v277_v30 = vpop.permute.xlu0 %276  ;;  %v287_v31 = vpop.permute.xlu1 %286 }
  0x8b   :  { %v738_v32 = vpop.permute.xlu0 %291  ;;  %v740_v33 = vpop.permute.xlu1 %296 }
  0x8f   :  { %v742_v34 = vpop.permute.xlu0 %301  ;;  %v744_v35 = vpop.permute.xlu1 %306 }
  0x93   :  { %v312_v37 = vpop.permute.xlu0 %311  ;;  %v317_v41 = vpop.permute.xlu1 %316 }
  0x97   :  { %v322_v52 = vpop.permute.xlu0 %321  ;;  %v327_v59 = vpop.permute.xlu1 %326 }
  0x9b   :  { %v332_v14 = vpop.permute.xlu0 %331  ;;  %v337_v25 = vpop.permute.xlu1 %336 }
  0xce   :  { %v584_v38 = vpop.f32.mrf.mxu0  ;;  %v592_v40 = vpop.f32.mrf.mxu1 }
  0xcf   :  { %v176_v42 = vadd.f32 %v584_v38, %v749_v36  ;;  %v208_v43 = vadd.f32 %v592_v40, %v749_v36 }
  0xd0   :  { %v167_v44 = vpop.f32.mrf.mxu0  ;;  %v199_v45 = vpop.f32.mrf.mxu1 }
  0xd1   :  { %v255_v46 = vsub.f32 %v754_v39, %v176_v42  ;;  %v263_v47 = vsub.f32 %v754_v39, %v208_v43  ;;  %v168_v48 = vadd.f32 %v749_v36, %v167_v44  ;;  %v200_v49 = vadd.f32 %v749_v36, %v199_v45 }
  0xd2   :  { %v585_v50 = vpop.f32.mrf.mxu0  ;;  %v593_v51 = vpop.f32.mrf.mxu1 }
  0xd3   :  { %v253_v53 = vsub.f32 %v754_v39, %v168_v48  ;;  %v261_v54 = vsub.f32 %v754_v39, %v200_v49  ;;  %v179_v55 = vadd.f32 %v585_v50, %v749_v36  ;;  %v211_v56 = vadd.f32 %v593_v51, %v749_v36 }
  0xd4   :  { %v170_v57 = vpop.f32.mrf.mxu0  ;;  %v202_v58 = vpop.f32.mrf.mxu1  ;;  %v351_v60 = vmul.f32 %v282_v29, %v255_v46  ;;  %v359_v61 = vmul.f32 %v322_v52, %v263_v47 }
  0xd5   :  { %v256_v62 = vsub.f32 %v754_v39, %v179_v55  ;;  %v264_v63 = vsub.f32 %v754_v39, %v211_v56  ;;  %v171_v0 = vadd.f32 %v749_v36, %v170_v57  ;;  %v203_v1 = vadd.f32 %v749_v36, %v202_v58 }
  0xd6   :  { %v588_v2 = vpop.f32.mrf.mxu0  ;;  %v596_v3 = vpop.f32.mrf.mxu1  ;;  %v349_v4 = vmul.f32 %v272_v28, %v253_v53  ;;  %v357_v5 = vmul.f32 %v312_v37, %v261_v54  ;;  %v367_v15 = vadd.f32 %v351_v60, %v176_v42  ;;  %v375_v16 = vadd.f32 %v359_v61, %v208_v43 }
  0xd7   :  { %v192_v6 = vadd.f32 %v588_v2, %v749_v36  ;;  %v224_v7 = vadd.f32 %v596_v3, %v749_v36  ;;  %v352_v8 = vmul.f32 %v287_v31, %v256_v62  ;;  %v360_v9 = vmul.f32 %v327_v59, %v264_v63 }
  0xd8   :  { %v254_v10 = vsub.f32 %v754_v39, %v171_v0  ;;  %v262_v11 = vsub.f32 %v754_v39, %v203_v1  ;;  %v183_v12 = vpop.f32.mrf.mxu0  ;;  %v215_v13 = vpop.f32.mrf.mxu1  ;;  %v365_v26 = vadd.f32 %v349_v4, %v168_v48  ;;  %v373_v27 = vadd.f32 %v357_v5, %v200_v49 }
  0xd9   :  { %v184_v17 = vadd.f32 %v749_v36, %v183_v12  ;;  %v216_v18 = vadd.f32 %v749_v36, %v215_v13  ;;  %v368_v19 = vadd.f32 %v352_v8, %v179_v55  ;;  %v376_v20 = vadd.f32 %v360_v9, %v211_v56  ;;  %v342_v48 = vpop.permute.xlu0 %341  ;;  %v347_v55 = vpop.permute.xlu1 %346 }
  0xda   :  { %v350_v21 = vmul.f32 %v277_v30, %v254_v10  ;;  %v358_v22 = vmul.f32 %v317_v41, %v262_v11  ;;  %v589_v23 = vpop.f32.mrf.mxu0  ;;  %v597_v24 = vpop.f32.mrf.mxu1  ;;  %v259_v28 = vsub.f32 %v754_v39, %v192_v6  ;;  %v267_v29 = vsub.f32 %v754_v39, %v224_v7 }
  0xdb   :  { %v526_v31 = vpack.c.bf16 %v368_v19, %v367_v15  ;;  %v546_v37 = vpack.c.bf16 %v376_v20, %v375_v16  ;;  %v257_v44 = vsub.f32 %v754_v39, %v184_v17  ;;  %v265_v30 = vsub.f32 %v754_v39, %v216_v18 }
  0xdc   :  { %v366_v38 = vadd.f32 %v350_v21, %v171_v0  ;;  %v374_v40 = vadd.f32 %v358_v22, %v203_v1  ;;  %v186_v42 = vpop.f32.mrf.mxu0  ;;  %v218_v43 = vpop.f32.mrf.mxu1  ;;  %v195_v46 = vadd.f32 %v589_v23, %v749_v36  ;;  %v227_v47 = vadd.f32 %v597_v24, %v749_v36 }
  0xdd   :  { %558 = vst [vmem:[%s821_s5 + $0x8] sm:$0xff] %v526_v31   ;;  %562 = vst [vmem:[%s821_s5 + $0x28] sm:$0xff] %v546_v37   ;;  %v187_v49 = vadd.f32 %v749_v36, %v186_v42  ;;  %v219_v50 = vadd.f32 %v749_v36, %v218_v43  ;;  %v355_v51 = vmul.f32 %v742_v34, %v259_v28 }
  0xde   :  { %v521_v41 = vpack.c.bf16 %v366_v38, %v365_v26  ;;  %v541_v45 = vpack.c.bf16 %v374_v40, %v373_v27  ;;  %v363_v52 = vmul.f32 %v342_v48, %v267_v29  ;;  %v260_v53 = vsub.f32 %v754_v39, %v195_v46 }
  0xdf   :  { %v268_v54 = vsub.f32 %v754_v39, %v227_v47  ;;  %v353_v56 = vmul.f32 %v738_v32, %v257_v44  ;;  %v361_v57 = vmul.f32 %v332_v14, %v265_v30  ;;  %v258_v36 = vsub.f32 %v754_v39, %v187_v49 }
  0xe0   :  { %522 = vst [vmem:[%s821_s5] sm:$0xff] %v521_v41   ;;  %561 = vst [vmem:[%s821_s5 + $0x20] sm:$0xff] %v541_v45   ;;  %v266_v58 = vsub.f32 %v754_v39, %v219_v50  ;;  %v356_v59 = vmul.f32 %v744_v35, %v260_v53  ;;  %v371_v34 = vadd.f32 %v355_v51, %v192_v6 }
  0xe1   :  { %v364_v60 = vmul.f32 %v347_v55, %v268_v54  ;;  %v354_v61 = vmul.f32 %v740_v33, %v258_v36  ;;  %v379_v63 = vadd.f32 %v363_v52, %v224_v7  ;;  %v369_v2 = vadd.f32 %v353_v56, %v184_v17 }
  0xe2   :  { %v362_v62 = vmul.f32 %v337_v25, %v266_v58  ;;  %v372_v0 = vadd.f32 %v356_v59, %v195_v46  ;;  %v377_v3 = vadd.f32 %v361_v57, %v216_v18 }
  0xe3   :  { %v380_v1 = vadd.f32 %v364_v60, %v227_v47  ;;  %v370_v4 = vadd.f32 %v354_v61, %v187_v49 }
  0xe4   :  { %v378_v5 = vadd.f32 %v362_v62, %v219_v50  ;;  %v536_v32 = vpack.c.bf16 %v372_v0, %v371_v34 }
  0xe5   :  { %v556_v8 = vpack.c.bf16 %v380_v1, %v379_v63  ;;  %v531_v9 = vpack.c.bf16 %v370_v4, %v369_v2 }
  0xe6   :  { %v551_v10 = vpack.c.bf16 %v378_v5, %v377_v3  ;;  %560 = vst [vmem:[%s821_s5 + $0x18] sm:$0xff] %v536_v32  }
  0xe7   :  { %564 = vst [vmem:[%s821_s5 + $0x38] sm:$0xff] %v556_v8   ;;  %559 = vst [vmem:[%s821_s5 + $0x10] sm:$0xff] %v531_v9  }
  0xe8   :  { %563 = vst [vmem:[%s821_s5 + $0x30] sm:$0xff] %v551_v10  }

</bundles_post_ra>
